<compile_context>
chip_gen: v7x
topology: tpu7x:2x2x1
jax: 0.10.0
libtpu: 0.0.40
codegen_flags: <defaults>
</compile_context>

<pallas_src>
import math
from functools import partial

import jax
import jax.numpy as jnp
from jax import lax
from jax.experimental import pallas as pl
from jax.experimental.pallas import tpu as pltpu


def _pick_tile(dim, cap, multiple):
    """Largest tile <= cap that is a multiple of `multiple` and divides `dim`.
    Falls back to the full dim (always legal as a BlockSpec block size)."""
    if dim <= cap:
        return dim
    t = (cap // multiple) * multiple
    while t >= multiple:
        if dim % t == 0:
            return t
        t -= multiple
    return dim


def _equal_linear_kernel(*refs, scale, lr_mul, activation, has_bias, pool):
    if has_bias:
        x_ref, w_ref, b_ref, o_ref, acc_ref = refs
    else:
        x_ref, w_ref, o_ref, acc_ref = refs
        b_ref = None

    k = pl.program_id(1)

    @pl.when(k == 0)
    def _init():
        acc_ref[...] = jnp.zeros_like(acc_ref)

    x = x_ref[...]
    if pool:
        # x block is (B, H*W, tk): fused global average pool over the spatial axis.
        x = jnp.mean(x.astype(jnp.float32), axis=1)          # -> (B, tk)
    # Cast the (tiny) activation tile to the weight dtype so bf16 weights use the
    # bf16 MXU path; accumulation stays f32 via preferred_element_type.
    x = x.astype(w_ref.dtype)
    # Weight is pre-transposed to (K, N): lane-dense on out_dim, no in-kernel
    # transpose and no in-kernel weight scaling.
    acc_ref[...] += jnp.dot(x, w_ref[...], preferred_element_type=jnp.float32)

    @pl.when(k == pl.num_programs(1) - 1)
    def _finalize():
        # Fold the equalized-lr scale into the small accumulator (B x tn), in f32.
        out = acc_ref[...] * scale
        if has_bias:
            out = out + b_ref[...].astype(jnp.float32) * lr_mul
        if activation:
            # fused_leaky_relu: leaky_relu(slope=0.2) then sqrt(2) gain (f32 epilogue).
            out = jnp.where(out >= 0.0, out, 0.2 * out) * math.sqrt(2.0)
        o_ref[...] = out.astype(o_ref.dtype)


def _equal_linear_pallas(x, weight, bias, *, lr_mul, activation, weight_dtype,
                         tk_cap, tn_cap, vmem_limit_bytes):
    pooled = (x.ndim == 3)
    if pooled:
        B, HW, in_dim = x.shape
    else:
        B, in_dim = x.shape
    out_dim, in_dim_w = weight.shape
    assert in_dim_w == in_dim, (weight.shape, x.shape)

    scale = (1.0 / math.sqrt(in_dim)) * lr_mul
    has_bias = bias is not None

    # One-time relayout outside the kernel: (out_dim, in_dim) -> (in_dim, out_dim),
    # optionally cast to bf16 to halve HBM weight traffic.
    w_kn = weight.T
    if weight_dtype is not None:
        w_kn = w_kn.astype(weight_dtype)

    tk = _pick_tile(in_dim, tk_cap, 128)
    tn = _pick_tile(out_dim, tn_cap, 128)
    nk = pl.cdiv(in_dim, tk)
    nn = pl.cdiv(out_dim, tn)

    if pooled:
        x_spec = pl.BlockSpec((B, HW, tk), lambda n, k: (0, 0, k))
    else:
        x_spec = pl.BlockSpec((B, tk), lambda n, k: (0, k))

    in_specs = [x_spec, pl.BlockSpec((tk, tn), lambda n, k: (k, n))]
    args = [x, w_kn]
    if has_bias:
        in_specs.append(pl.BlockSpec((1, tn), lambda n, k: (0, n)))
        args.append(jnp.asarray(bias, jnp.float32).reshape(1, out_dim))

    kernel = partial(_equal_linear_kernel, scale=scale, lr_mul=lr_mul,
                     activation=bool(activation), has_bias=has_bias, pool=pooled)

    return pl.pallas_call(
        kernel,
        out_shape=jax.ShapeDtypeStruct((B, out_dim), x.dtype),
        grid_spec=pltpu.PrefetchScalarGridSpec(
            num_scalar_prefetch=0,
            grid=(nn, nk),                      # N parallel (megacore), K reduction last
            in_specs=in_specs,
            out_specs=pl.BlockSpec((B, tn), lambda n, k: (0, n)),
            scratch_shapes=[pltpu.VMEM((B, tn), jnp.float32)],
        ),
        compiler_params=pltpu.CompilerParams(
            dimension_semantics=("parallel", "arbitrary"),
            vmem_limit_bytes=vmem_limit_bytes,
        ),
    )(*args)


def equal_linear(x, weight, bias=None, *, lr_mul=1.0, activation=None,
                 weight_dtype=None, tk_cap=2048, tn_cap=256,
                 vmem_limit_bytes=48 * 1024 * 1024):
    """Pallas EqualLinear forward. x:(B,in_dim), weight:(out_dim,in_dim), bias:(out_dim,)|None."""
    return _equal_linear_pallas(x, weight, bias, lr_mul=lr_mul, activation=activation,
                                weight_dtype=weight_dtype, tk_cap=tk_cap, tn_cap=tn_cap,
                                vmem_limit_bytes=vmem_limit_bytes)


def backbone_into_w_head(feat, weight, bias=None, *, lr_mul=1.0,
                         weight_dtype=None, tk_cap=2048, tn_cap=256,
                         vmem_limit_bytes=48 * 1024 * 1024):
    """AdaptiveAvgPool2d((1,1)) + view(-1, C) + EqualLinear, fused in one pallas_call.

    feat: (B, C, H, W). The spatial pool runs in-kernel per channel tile; the
    channel-last relayout is a single XLA transpose in the wrapper."""
    B, C, H, W = feat.shape
    x3 = jnp.transpose(feat, (0, 2, 3, 1)).reshape(B, H * W, C)
    return _equal_linear_pallas(x3, weight, bias, lr_mul=lr_mul, activation=None,
                                weight_dtype=weight_dtype, tk_cap=tk_cap, tn_cap=tn_cap,
                                vmem_limit_bytes=vmem_limit_bytes)


# ---------------- pure-JAX references ----------------

def _ref_equal_linear(x, weight, bias, *, lr_mul=1.0, activation=None):
    scale = (1.0 / math.sqrt(x.shape[-1])) * lr_mul
    out = jnp.dot(x, (weight * scale).T, precision=lax.Precision.HIGHEST)
    if bias is not None:
        out = out + bias * lr_mul
    if activation:
        out = jnp.where(out >= 0.0, out, 0.2 * out) * math.sqrt(2.0)
    return out


def _ref_head(feat, weight, bias, *, lr_mul=1.0):
    x = jnp.mean(feat, axis=(2, 3))
    return _ref_equal_linear(x, weight, bias, lr_mul=lr_mul)


if __name__ == "__main__":
    key = jax.random.PRNGKey(0)
    k_w, k_b, k_f, k_x = jax.random.split(key, 4)

    # ---- BackboneEncoderUsingLastLayerIntoW head: pool -> view -> EqualLinear(512, 512, lr_mul=1)
    B, C, H, W = 2, 512, 8, 8
    lr_mul = 1.0
    weight = jax.random.normal(k_w, (C, C), dtype=jnp.float32) / lr_mul
    bias = 0.1 * jax.random.normal(k_b, (C,), dtype=jnp.float32)  # module inits zeros; nonzero to exercise path
    feat = jax.random.normal(k_f, (B, C, H, W), dtype=jnp.float32)

    out_head = jax.block_until_ready(backbone_into_w_head(feat, weight, bias, lr_mul=lr_mul))
    ref_head = _ref_head(feat, weight, bias, lr_mul=lr_mul)
    assert out_head.shape == (B, C)
    assert jnp.allclose(out_head, ref_head, atol=1e-3, rtol=1e-3), \
        float(jnp.max(jnp.abs(out_head - ref_head)))

    # ---- Standalone EqualLinear: exercise K/N tiling (tk=tn=128 -> 4x4 grid), lr_mul != 1
    x = jax.random.normal(k_x, (B, C), dtype=jnp.float32)
    lr2 = 0.01
    w2 = jax.random.normal(k_w, (C, C), dtype=jnp.float32) / lr2
    b2 = 0.1 * jax.random.normal(k_b, (C,), dtype=jnp.float32)

    out_plain = jax.block_until_ready(
        equal_linear(x, w2, b2, lr_mul=lr2, activation=None, tk_cap=128, tn_cap=128))
    ref_plain = _ref_equal_linear(x, w2, b2, lr_mul=lr2, activation=None)
    assert jnp.allclose(out_plain, ref_plain, atol=1e-3, rtol=1e-3), \
        float(jnp.max(jnp.abs(out_plain - ref_plain)))

    # ---- fused_lrelu activation path
    out_act = jax.block_until_ready(
        equal_linear(x, w2, b2, lr_mul=lr2, activation="fused_lrelu"))
    ref_act = _ref_equal_linear(x, w2, b2, lr_mul=lr2, activation="fused_lrelu")
    assert jnp.allclose(out_act, ref_act, atol=1e-3, rtol=1e-3), \
        float(jnp.max(jnp.abs(out_act - ref_act)))

    # ---- no-bias path (no dummy bias DMA)
    out_nb = jax.block_until_ready(equal_linear(x, w2, None, lr_mul=lr2))
    ref_nb = _ref_equal_linear(x, w2, None, lr_mul=lr2)
    assert jnp.allclose(out_nb, ref_nb, atol=1e-3, rtol=1e-3), \
        float(jnp.max(jnp.abs(out_nb - ref_nb)))

    # ---- bf16 weight streaming (half HBM traffic), f32 MXU accumulation
    out_bf16 = jax.block_until_ready(
        equal_linear(x, w2, b2, lr_mul=lr2, weight_dtype=jnp.bfloat16))
    assert jnp.allclose(out_bf16, ref_plain, atol=5e-2, rtol=5e-2), \
        float(jnp.max(jnp.abs(out_bf16 - ref_plain)))

    print("KERNEL_OK")
</pallas_src>

<mosaic_0001>
module attributes {stable_mosaic.version = 11 : i64} {
  func.func @_equal_linear_kernel(%arg0: i32, %arg1: i32, %arg2: memref<2x64x512xf32, #tpu.memory_space<vmem>>, %arg3: memref<512x256xf32, #tpu.memory_space<vmem>>, %arg4: memref<1x256xf32, #tpu.memory_space<vmem>>, %arg5: memref<2x256xf32, #tpu.memory_space<vmem>>, %arg6: memref<2x256xf32, #tpu.memory_space<vmem>>) attributes {dimension_semantics = [#tpu.dimension_semantics<parallel>, #tpu.dimension_semantics<arbitrary>], iteration_bounds = array<i64: 2, 1>, scalar_prefetch = 0 : i64, scratch_operands = 1 : i64, tpu.core_type = #tpu.core_type<tc>, window_params = [{transform_indices = @transform_0, window_bounds = array<i64: 2, 64, 512>}, {transform_indices = @transform_1, window_bounds = array<i64: 512, 256>}, {transform_indices = @transform_2, window_bounds = array<i64: 1, 256>}, {transform_indices = @transform_3, window_bounds = array<i64: 2, 256>}]} {
    %c0_i32 = arith.constant 0 : i32
    %0 = arith.cmpi eq, %arg1, %c0_i32 : i32
    %1 = arith.extui %0 : i1 to i32
    %c0_i32_0 = arith.constant 0 : i32
    %2 = arith.cmpi ne, %1, %c0_i32_0 : i32
    scf.if %2 {
      %cst_13 = arith.constant 0.000000e+00 : f32
      %15 = vector.broadcast %cst_13 : f32 to vector<2x256xf32>
      %c0_14 = arith.constant 0 : index
      %c0_15 = arith.constant 0 : index
      %16 = vector.load %arg6[%c0_14, %c0_15] : memref<2x256xf32, #tpu.memory_space<vmem>>, vector<2x256xf32>
      tpu.vector_store %arg6[%c0_14, %c0_15], %15 {strides = array<i32>} : memref<2x256xf32, #tpu.memory_space<vmem>>, vector<2x256xf32>,
    } else {
    }
    %c0 = arith.constant 0 : index
    %c0_1 = arith.constant 0 : index
    %c0_2 = arith.constant 0 : index
    %3 = vector.load %arg2[%c0, %c0_1, %c0_2] : memref<2x64x512xf32, #tpu.memory_space<vmem>>, vector<2x64x512xf32>
    %cst = arith.constant dense<0.000000e+00> : vector<2x512xf32>
    %4 = vector.multi_reduction <add>, %3, %cst [1] : vector<2x64x512xf32> to vector<2x512xf32>
    %cst_3 = arith.constant 6.400000e+01 : f32
    %5 = vector.broadcast %cst_3 : f32 to vector<2x512xf32>
    %6 = arith.divf %4, %5 : vector<2x512xf32>
    %c0_4 = arith.constant 0 : index
    %c0_5 = arith.constant 0 : index
    %7 = vector.load %arg6[%c0_4, %c0_5] : memref<2x256xf32, #tpu.memory_space<vmem>>, vector<2x256xf32>
    %c0_6 = arith.constant 0 : index
    %c0_7 = arith.constant 0 : index
    %8 = vector.load %arg3[%c0_6, %c0_7] : memref<512x256xf32, #tpu.memory_space<vmem>>, vector<512x256xf32>
    %cst_8 = arith.constant dense<0.000000e+00> : vector<2x256xf32>
    %9 = tpu.matmul %6, %8, %cst_8 {dimension_numbers = #tpu.dot_dimension_numbers<[1], [0], [0], [1], [0, 0, 1, 1], [], []>} : vector<2x512xf32>, vector<512x256xf32>, vector<2x256xf32> -> vector<2x256xf32>
    %10 = arith.addf %7, %9 : vector<2x256xf32>
    %c0_9 = arith.constant 0 : index
    %c0_10 = arith.constant 0 : index
    %11 = vector.load %arg6[%c0_9, %c0_10] : memref<2x256xf32, #tpu.memory_space<vmem>>, vector<2x256xf32>
    tpu.vector_store %arg6[%c0_9, %c0_10], %10 {strides = array<i32>} : memref<2x256xf32, #tpu.memory_space<vmem>>, vector<2x256xf32>,
    %c0_i32_11 = arith.constant 0 : i32
    %12 = arith.cmpi eq, %arg1, %c0_i32_11 : i32
    %13 = arith.extui %12 : i1 to i32
    %c0_i32_12 = arith.constant 0 : i32
    %14 = arith.cmpi ne, %13, %c0_i32_12 : i32
    scf.if %14 {
      %c0_13 = arith.constant 0 : index
      %c0_14 = arith.constant 0 : index
      %15 = vector.load %arg6[%c0_13, %c0_14] : memref<2x256xf32, #tpu.memory_space<vmem>>, vector<2x256xf32>
      %cst_15 = arith.constant 0.0441941731 : f32
      %16 = vector.broadcast %cst_15 : f32 to vector<2x256xf32>
      %17 = arith.mulf %15, %16 : vector<2x256xf32>
      %c0_16 = arith.constant 0 : index
      %c0_17 = arith.constant 0 : index
      %18 = vector.load %arg4[%c0_16, %c0_17] : memref<1x256xf32, #tpu.memory_space<vmem>>, vector<1x256xf32>
      %cst_18 = arith.constant 1.000000e+00 : f32
      %19 = vector.broadcast %cst_18 : f32 to vector<1x256xf32>
      %20 = arith.mulf %18, %19 : vector<1x256xf32>
      %21 = vector.broadcast %20 : vector<1x256xf32> to vector<2x256xf32>
      %22 = arith.addf %17, %21 : vector<2x256xf32>
      %c0_19 = arith.constant 0 : index
      %c0_20 = arith.constant 0 : index
      %23 = vector.load %arg5[%c0_19, %c0_20] : memref<2x256xf32, #tpu.memory_space<vmem>>, vector<2x256xf32>
      tpu.vector_store %arg5[%c0_19, %c0_20], %22 {strides = array<i32>} : memref<2x256xf32, #tpu.memory_space<vmem>>, vector<2x256xf32>,
    } else {
    }
    return
  }
  func.func @transform_0(%arg0: i32, %arg1: i32) -> (i32, i32, i32) {
    %c0_i32 = arith.constant 0 : i32
    %c0_i32_0 = arith.constant 0 : i32
    %c0_i32_1 = arith.constant 0 : i32
    return %c0_i32, %c0_i32_0, %arg1 : i32, i32, i32
  }
  func.func @transform_1(%arg0: i32, %arg1: i32) -> (i32, i32) {
    %c0_i32 = arith.constant 0 : i32
    return %arg1, %arg0 : i32, i32
  }
  func.func @transform_2(%arg0: i32, %arg1: i32) -> (i32, i32) {
    %c0_i32 = arith.constant 0 : i32
    %c0_i32_0 = arith.constant 0 : i32
    return %c0_i32, %arg0 : i32, i32
  }
  func.func @transform_3(%arg0: i32, %arg1: i32) -> (i32, i32) {
    %c0_i32 = arith.constant 0 : i32
    %c0_i32_0 = arith.constant 0 : i32
    return %c0_i32, %arg0 : i32, i32
  }
}

</mosaic_0001>

<bundles_post_ra>
// kernel: tpu_custom_call.1
= control target key start
LH: loop header
LB: loop body
LE: loop exit
PB: predicated region body
PF: predicated region fallthrough
CT: control target
= control target key end

     0   :  { %8 = vsyncpa [#allocation4], 0  ;;  %s1728_s0 = inlined_call_operand.hbm [shape: f32[2,64,512], index: 0, kind: input, shape index: {}]   ;;  %s1729_s1 = inlined_call_operand.hbm [shape: f32[512,512], index: 1, kind: input, shape index: {}]   ;;  %s1730_s2 = inlined_call_operand.vmem [shape: f32[1,512], index: 2, kind: input, shape index: {}]   ;;  %s1731_s3 = inlined_call_operand.hbm [shape: f32[2,512], index: 3, kind: output, shape index: {}]  }
   0x1   :  { %9 = vsyncpa [#allocation7], 0 }
   0x2   :  { %11 = vsyncpa [#allocation7 + $0x1], 0 }
   0x3   :  { %12 = vsyncpa [#allocation5], 0 }
   0x4   :  { %14 = vsyncpa [#allocation5 + $0x1], 0  ;;  %s1284_s12 = smov 0   ;;  %s1286_s13 = smov 0  }
   0x5   :  { %s1288_s14 = smov 0   ;;  %s1290_s15 = smov 0  }
   0x6   :  { %s1292_s16 = smov 0   ;;  %s1294_s17 = smov 0  }
   0x7 LB: > { %s880_s18 = sadd.s32 4294967295, %s1253_s17   ;;  %s881_s19 = sadd.s32 4294967294, %s1253_s17   ;;  %s1253_s17 = sphi %s1294_s17, %s20_s17   ;;  %s1249_s16 = sphi %s1292_s16, %s1757_s16   ;;  %s1245_s15 = sphi %s1290_s15, %s1756_s15   ;;  %s1241_s14 = sphi %s1288_s14, %s1755_s14   ;;  %s1237_s13 = sphi %s1286_s13, %s1754_s13   ;;  %s1233_s12 = sphi %s1284_s12, %s1753_s12  }
   0x8   : > { %p74_p0 = scmp.ne.s32.totalorder %s1241_s14, %s1237_s13  ;;  %p75_p1 = scmp.eq.s32.totalorder %s1253_s17, 0 }
   0x9   : > { %p80_p2 = scmp.ne.s32.totalorder %s1237_s13, %s1233_s12  ;;  %p1321_p3 = scmp.eq.s32.totalorder %s880_s18, 0 }
   0xa   : > { %p1325_p4 = por %p75_p1, %p74_p0  ;;  %p130_p5 = scmp.eq.s32.totalorder %s880_s18, 1 }
   0xb   : > { %s1738_s20 = scalar_select %p1321_p3, 1, 0 }
   0xc   : > { %p1331_p6 = por %p1321_p3, %p80_p2  ;;  %p136_p7 = scmp.eq.s32.totalorder %s881_s19, 1 }
   0xd   : > { %p1335_p8 = por %p130_p5, %p74_p0  ;;  %p882_p9 = scmp.ge.s32.totalorder %s1253_s17, 1 }
   0xe   : > { %s1740_s22 = scalar_select %p1331_p6, 1, 0 }
   0xf   : > { %s1741_s23 = scalar_select %p1335_p8, 1, 0 }
  0x10   : > { %p1340_p10 = por %p136_p7, %p80_p2  ;;  %p143_p11 = scmp.lt.s32.totalorder %s1253_s17, 3 }
  0x11   : > { %s1255_s26 = smov [#allocation3]   ;;  %p1051_p1 = scmp.lt.s32.totalorder %s1253_s17, 2 }
  0x12   : > { %s1742_s24 = scalar_select %p1340_p10, 1, 0 }
  0x13   : > { %p1345_p12 = pnand %p882_p9, %p143_p11  ;;  %s158_s27 = sshll.u32 %s1255_s26, 4  ;;  %s1349_s27 = int_to_ptr.vmem [resolvable:$true] %s158_s27 }
  0x14   : > { %p1363_p2 = pnand %p1051_p1, %p1325_p4  ;;  %s32_s30 = sadd.s32 1, %s1249_s16 }
  0x15   : > { %s1743_s25 = scalar_select %p1345_p12, 1, 0 }
  0x16   : > { %p1038_p13 = pneg %p1345_p12  ;;  %s1109_s6 = scalar_lea.hbm %s1728_s0, 8192 }
  0x17   : > { %s1745_s29 = scalar_select %p1363_p2, 1, 0 }
  0x18   : > { %p1357_p5 = pnand %p1038_p13, %p1321_p3  ;;  %p1110_p7 = scmp.ne.s32.totalorder %s1728_s0, %s1109_s6 }
  0x19   : > { %p1116_p4 = scmp.lt.u32.totalorder %s1109_s6, %s1728_s0 }
  0x1a   : > { %p1111_p9 = pneg %p1357_p5 }
  0x1c   : > { %p1112_p11 = pnand %p1111_p9, %p1110_p7 }
  0x1e   : > { %p1113_p13 = pneg %p1112_p11 }
  0x20   : > { %p1118_p1 = pnand %p1116_p4, %p1113_p13 }
  0x22   : > { %1121 = shalt.err (!%p1118_p1)
}
  0x23   : > { %s1122_s11 = scalar_lea.vmem %s1349_s27, 8192  ;;  %p1130_p6 = scmp.lt.s32.totalorder %s1349_s27, %s1349_s27 }
  0x24   : > { %p1123_p0 = scmp.ne.s32.totalorder %s1349_s27, %s1122_s11  ;;  %p1131_p3 = scmp.lt.s32.totalorder %s1122_s11, %s1122_s11 }
  0x26   : > { %p1125_p10 = pnand %p1123_p0, %p1111_p9  ;;  %p1132_p12 = por %p1131_p3, %p1130_p6 }
  0x28   : > { %p1126_p8 = pneg %p1125_p10 }
  0x2a   : > { %p1133_p2 = pnand %p1132_p12, %p1126_p8 }
  0x2c   : > { %1136 = shalt.err (!%p1133_p2)
}
  0x2d   : > { %s1256_s18 = smov 512   ;;  %s1257_s19 = smov 32  }
  0x2e   : > { %1041 = dma.hbm_to_vmem [thread:$0]  (!%p1357_p5), %s1728_s0, 8192, %s1349_s27, [#allocation4], %s1256_s18, %s1256_s18, %s1257_s19  }
  0x2f   : > { %p34_p10 = scmp.ge.s32.totalorder %s32_s30, 2  ;;  %s67_s4 = sadd.s32 1, %s1241_s14 }
  0x30   : > { %s172_s5 = sand.u32 1, %s1241_s14   ;;  %s898_s8 = sshll.u32 %s1249_s16, 8 }
  0x31   : > { %s1759_s30 = smov (%p34_p10, %s32_s30), 0  ;;  %s885_s6 = sshll.u32 %s172_s5, 10 }
  0x32   : > { %s63_s7 = ssub.s32 %s1249_s16, %s1759_s30  ;;  %s1401_s10 = scalar_lea.hbm %s1729_s1, %s898_s8 }
  0x33   : > { %p65_p3 = scmp.eq.s32.totalorder %s63_s7, 0  ;;  %s176_s27 = scalar_lea.vmem [#allocation6], %s885_s6 }
  0x34   : > { %s186_s11 = sshll.u32 %s176_s27, 4  ;;  %s1408_s21 = scalar_lea.sflag [#allocation7], %s172_s5  ;;  %s1406_s11 = int_to_ptr.vmem [resolvable:$true] %s186_s11 }
  0x35   : > { %s1404_s19 = scalar_select %p65_p3, %s1241_s14, %s67_s4  }
  0x36   : > { %s1137_s26 = scalar_lea.hbm %s1401_s10, 16384  ;;  %p1746_p8 = scmp.ne.s32.totalorder %s1745_s29, 0 }
  0x37   : > { %p1138_p6 = scmp.ne.s32.totalorder %s1401_s10, %s1137_s26  ;;  %s1142_s9 = scalar_lea.hbm %s1729_s1, 32768 }
  0x38   : > { %p1139_p12 = pneg %p1746_p8  ;;  %p1143_p2 = scmp.lt.u32.totalorder %s1401_s10, %s1729_s1 }
  0x39   : > { %p1144_p7 = scmp.lt.u32.totalorder %s1142_s9, %s1137_s26  ;;  %p1146_p11 = scmp.lt.u32.totalorder %s1137_s26, %s1401_s10 }
  0x3a   : > { %p1140_p0 = pnand %p1139_p12, %p1138_p6 }
  0x3b   : > { %p1145_p9 = por %p1144_p7, %p1143_p2 }
  0x3c   : > { %p1141_p5 = pneg %p1140_p0 }
  0x3d   : > { %p1147_p13 = por %p1146_p11, %p1145_p9 }
  0x3f   : > { %p1148_p4 = pnand %p1147_p13, %p1141_p5 }
  0x41   : > { %1151 = shalt.err (!%p1148_p4)
}
  0x42   : > { %s1152_s4 = scalar_lea.vmem %s1406_s11, 16384  ;;  %s1258_s5 = smov [#allocation6]  }
  0x43   : > { %p1153_p1 = scmp.ne.s32.totalorder %s1406_s11, %s1152_s4  ;;  %s1157_s27 = sshll.u32 %s1258_s5, 4  ;;  %s1158_s27 = int_to_ptr.vmem [resolvable:$false] %s1157_s27 }
  0x44   : > { %s1159_s7 = scalar_lea.vmem %s1158_s27, 32768  ;;  %p1160_p6 = scmp.lt.s32.totalorder %s1406_s11, %s1158_s27 }
  0x45   : > { %p1155_p10 = pnand %p1153_p1, %p1139_p12  ;;  %p1161_p0 = scmp.lt.s32.totalorder %s1159_s7, %s1152_s4 }
  0x47   : > { %p1156_p3 = pneg %p1155_p10  ;;  %p1162_p2 = por %p1161_p0, %p1160_p6 }
  0x49   : > { %p1163_p7 = pnand %p1162_p2, %p1156_p3 }
  0x4b   : > { %1166 = shalt.err (!%p1163_p7)
}
  0x4c   : > { %s1259_s26 = smov 256   ;;  %s1260_s8 = smov 16  }
  0x4d   : > { %1045 = dma.hbm_to_vmem [thread:$0]  (!%p1746_p8), %s1401_s10, 16384, %s1406_s11, %s1408_s21, %s1256_s18, %s1259_s26, %s1260_s8  }
  0x4e   : > { %p1747_p12 = scmp.ne.s32.totalorder %s1743_s25, 0 }
  0x4f   : > { %p1748_p5 = scmp.ne.s32.totalorder (!%p1747_p12), %s1738_s20, 0 }
  0x50   : > { %206 = sbr.rel (%p1747_p12) target bundleno = 429 (0x1ad), region = 32 }
  0x57   : > { %1220 = dma.done.wait (%p1748_p5), [#allocation4], 8192  }
  0x58   : > { %1222 = vsyncadd (%p1748_p5), [#allocation4], 4294959104  ;;  %s1444_s9 = sand.u32 1, %s1237_s13   ;;  %p1749_p8 = scmp.ne.s32.totalorder %s1740_s22, 0 }
  0x59   : > { %s890_s6 = sshll.u32 %s1444_s9, 10  ;;  %s213_s28 = scalar_lea.sflag [#allocation7], %s1444_s9 }
  0x5a   : > { %s1448_s29 = scalar_lea.vmem [#allocation6], %s890_s6 }
  0x5b   : > { %1224 = dma.done.wait (%p1749_p8), %s213_s28, 16384  }
  0x5c   : > { %1226 = vsyncadd (%p1749_p8), %s213_s28, 4294950912  ;;  %v436_v0 = vld [vmem:[%s1448_s29 + $0x8] sm:$0xff]  ;;  %v438_v1 = vld [vmem:[%s1448_s29 + $0x18] sm:$0xff]  ;;  %vm571_vm0 = vcmask 1041409   ;;  %s892_s20 = sshll.u32 %s1245_s15, 1  ;;  %s891_s10 = sshll.u32 %s1444_s9, 2 }
  0x5d   : > { %v500_v2 = vld [vmem:[%s1448_s29 + $0x208] sm:$0xff]  ;;  %v900_v3 = vpack.c.bf16 %v438_v1, %v436_v0  ;;  %v502_v4 = vld [vmem:[%s1448_s29 + $0x218] sm:$0xff]  ;;  %v435_v5 = vld [vmem:[%s1448_s29] sm:$0xff]  ;;  %p247_p9 = scmp.lt.s32.totalorder %s892_s20, 3  ;;  %s899_s11 = sshll.u32 %s1245_s15, 6 }
  0x5e   : > { %v437_v6 = vld [vmem:[%s1448_s29 + $0x10] sm:$0xff]  ;;  %v964_v7 = vpack.c.bf16 %v502_v4, %v500_v2  ;;  %v499_v9 = vld [vmem:[%s1448_s29 + $0x200] sm:$0xff]  ;;  %v440_v11 = vld [vmem:[%s1448_s29 + $0x28] sm:$0xff]  ;;  %s242_s21 = scalar_lea.vmem [#allocation8], %s891_s10  ;;  %s1679_s7 = scalar_lea.hbm %s1731_s3, %s899_s11 }
  0x5f   : > { %v902_v8 = vpack.c.bf16 %v437_v6, %v435_v5  ;;  %v501_v10 = vld [vmem:[%s1448_s29 + $0x210] sm:$0xff]  ;;  %901 = vmatprep.subr.bf16.mxu1 %v900_v3  ;;  %v442_v13 = vld [vmem:[%s1448_s29 + $0x38] sm:$0xff]  ;;  %v504_v14 = vld [vmem:[%s1448_s29 + $0x228] sm:$0xff]  ;;  %s1761_s20 = smov (!%p247_p9, %s892_s20), 3  ;;  %s776_s4 = sshll.u32 %s242_s21, 4  ;;  %s1681_s4 = int_to_ptr.vmem [resolvable:$true] %s776_s4 }
  0x60   : > { %v966_v12 = vpack.c.bf16 %v501_v10, %v499_v9  ;;  %v506_v15 = vld [vmem:[%s1448_s29 + $0x238] sm:$0xff]  ;;  %965 = vmatprep.subr.bf16.mxu0 %v964_v7  ;;  %v904_v16 = vpack.c.bf16 %v442_v13, %v440_v11  ;;  %v439_v18 = vld [vmem:[%s1448_s29 + $0x20] sm:$0xff]  ;;  %v441_v19 = vld [vmem:[%s1448_s29 + $0x30] sm:$0xff]  ;;  %s249_s18 = scalar_lea.vmem %s1730_s2, %s1761_s20  ;;  %s762_s26 = scalar_lea.sflag [#allocation5], %s1444_s9 }
  0x61   : > { %903 = vmatpush1.bf16.msra.mxu1 %v902_v8  ;;  %v968_v17 = vpack.c.bf16 %v506_v15, %v504_v14  ;;  %v503_v20 = vld [vmem:[%s1448_s29 + $0x220] sm:$0xff]  ;;  %v906_v21 = vpack.c.bf16 %v441_v19, %v439_v18  ;;  %v505_v22 = vld [vmem:[%s1448_s29 + $0x230] sm:$0xff]  ;;  %v444_v23 = vld [vmem:[%s1448_s29 + $0x48] sm:$0xff]  ;;  %s1167_s8 = scalar_lea.vmem %s1681_s4, 64  ;;  %p1750_p13 = scmp.ne.s32.totalorder %s1741_s23, 0 }
  0x62   : > { %967 = vmatpush1.bf16.msra.mxu0 %v966_v12  ;;  %v446_v24 = vld [vmem:[%s1448_s29 + $0x58] sm:$0xff]  ;;  %905 = vmatprep.subr.bf16.mxu1 %v904_v16  ;;  %v970_v25 = vpack.c.bf16 %v505_v22, %v503_v20  ;;  %v508_v27 = vld [vmem:[%s1448_s29 + $0x248] sm:$0xff]  ;;  %v443_v29 = vld [vmem:[%s1448_s29 + $0x40] sm:$0xff]  ;;  %p1168_p11 = scmp.ne.s32.totalorder %s1681_s4, %s1167_s8  ;;  %s1263_s15 = smov [#allocation8]  }
  0x63   : > { %969 = vmatprep.subr.bf16.mxu0 %v968_v17  ;;  %v908_v26 = vpack.c.bf16 %v446_v24, %v444_v23  ;;  %v510_v28 = vld [vmem:[%s1448_s29 + $0x258] sm:$0xff]  ;;  %v445_v31 = vld [vmem:[%s1448_s29 + $0x50] sm:$0xff]  ;;  %v507_v32 = vld [vmem:[%s1448_s29 + $0x240] sm:$0xff]  ;;  %s1171_s6 = sshll.u32 %s1263_s15, 4  ;;  %s1172_s6 = int_to_ptr.vmem [resolvable:$false] %s1171_s6 }
  0x64   : > { %v972_v30 = vpack.c.bf16 %v510_v28, %v508_v27  ;;  %v509_v33 = vld [vmem:[%s1448_s29 + $0x250] sm:$0xff]  ;;  %v910_v34 = vpack.c.bf16 %v445_v31, %v443_v29  ;;  %v448_v35 = vld [vmem:[%s1448_s29 + $0x68] sm:$0xff]  ;;  %v450_v36 = vld [vmem:[%s1448_s29 + $0x78] sm:$0xff]  ;;  %p1169_p4 = pnand %p1168_p11, %p1750_p13  ;;  %s1173_s28 = scalar_lea.vmem %s1172_s6, 128 }
  0x65   : > { %907 = vmatpush1.bf16.msra.mxu1 %v906_v21  ;;  %v512_v37 = vld [vmem:[%s1448_s29 + $0x268] sm:$0xff]  ;;  %v974_v38 = vpack.c.bf16 %v509_v33, %v507_v32  ;;  %v912_v39 = vpack.c.bf16 %v450_v36, %v448_v35  ;;  %v514_v40 = vld [vmem:[%s1448_s29 + $0x278] sm:$0xff]  ;;  %v447_v41 = vld [vmem:[%s1448_s29 + $0x60] sm:$0xff]  ;;  %p1174_p10 = scmp.lt.s32.totalorder %s1681_s4, %s1172_s6  ;;  %p1175_p3 = scmp.lt.s32.totalorder %s1173_s28, %s1167_s8 }
  0x66   : > { %971 = vmatpush1.bf16.msra.mxu0 %v970_v25  ;;  %909 = vmatprep.subr.bf16.mxu1 %v908_v26  ;;  %v449_v42 = vld [vmem:[%s1448_s29 + $0x70] sm:$0xff]  ;;  %v976_v43 = vpack.c.bf16 %v514_v40, %v512_v37  ;;  %v511_v44 = vld [vmem:[%s1448_s29 + $0x260] sm:$0xff]  ;;  %v452_v46 = vld [vmem:[%s1448_s29 + $0x88] sm:$0xff]  ;;  %p1170_p1 = pneg %p1169_p4 }
  0x67   : > { %973 = vmatprep.subr.bf16.mxu0 %v972_v30  ;;  %v513_v45 = vld [vmem:[%s1448_s29 + $0x270] sm:$0xff]  ;;  %v454_v47 = vld [vmem:[%s1448_s29 + $0x98] sm:$0xff]  ;;  %v516_v48 = vld [vmem:[%s1448_s29 + $0x288] sm:$0xff]  ;;  %v914_v50 = vpack.c.bf16 %v449_v42, %v447_v41  ;;  %p1176_p6 = por %p1175_p3, %p1174_p10 }
  0x68   : > { %v518_v49 = vld [vmem:[%s1448_s29 + $0x298] sm:$0xff]  ;;  %v978_v51 = vpack.c.bf16 %v513_v45, %v511_v44  ;;  %v916_v52 = vpack.c.bf16 %v454_v47, %v452_v46  ;;  %v451_v53 = vld [vmem:[%s1448_s29 + $0x80] sm:$0xff]  ;;  %v453_v54 = vld [vmem:[%s1448_s29 + $0x90] sm:$0xff] }
  0x69   : > { %911 = vmatpush1.bf16.msra.mxu1 %v910_v34  ;;  %v515_v55 = vld [vmem:[%s1448_s29 + $0x280] sm:$0xff]  ;;  %v980_v56 = vpack.c.bf16 %v518_v49, %v516_v48  ;;  %v517_v57 = vld [vmem:[%s1448_s29 + $0x290] sm:$0xff]  ;;  %v456_v58 = vld [vmem:[%s1448_s29 + $0xa8] sm:$0xff]  ;;  %v918_v62 = vpack.c.bf16 %v453_v54, %v451_v53  ;;  %p1177_p0 = pnand %p1176_p6, %p1170_p1 }
  0x6a   : > { %975 = vmatpush1.bf16.msra.mxu0 %v974_v38  ;;  %913 = vmatprep.subr.bf16.mxu1 %v912_v39  ;;  %v458_v59 = vld [vmem:[%s1448_s29 + $0xb8] sm:$0xff]  ;;  %v520_v60 = vld [vmem:[%s1448_s29 + $0x2a8] sm:$0xff]  ;;  %v982_v63 = vpack.c.bf16 %v517_v57, %v515_v55  ;;  %v455_v1 = vld [vmem:[%s1448_s29 + $0xa0] sm:$0xff] }
  0x6b   : > { %977 = vmatprep.subr.bf16.mxu0 %v976_v43  ;;  %v522_v61 = vld [vmem:[%s1448_s29 + $0x2b8] sm:$0xff]  ;;  %v920_v0 = vpack.c.bf16 %v458_v59, %v456_v58  ;;  %v457_v2 = vld [vmem:[%s1448_s29 + $0xb0] sm:$0xff]  ;;  %v519_v3 = vld [vmem:[%s1448_s29 + $0x2a0] sm:$0xff] }
  0x6c   : > { %v984_v4 = vpack.c.bf16 %v522_v61, %v520_v60  ;;  %v521_v5 = vld [vmem:[%s1448_s29 + $0x2b0] sm:$0xff]  ;;  %v460_v6 = vld [vmem:[%s1448_s29 + $0xc8] sm:$0xff]  ;;  %v462_v7 = vld [vmem:[%s1448_s29 + $0xd8] sm:$0xff]  ;;  %v922_v10 = vpack.c.bf16 %v457_v2, %v455_v1 }
  0x6d   : > { %915 = vmatpush1.bf16.msra.mxu1 %v914_v50  ;;  %v524_v8 = vld [vmem:[%s1448_s29 + $0x2c8] sm:$0xff]  ;;  %v526_v9 = vld [vmem:[%s1448_s29 + $0x2d8] sm:$0xff]  ;;  %v986_v11 = vpack.c.bf16 %v521_v5, %v519_v3  ;;  %v924_v12 = vpack.c.bf16 %v462_v7, %v460_v6  ;;  %v459_v13 = vld [vmem:[%s1448_s29 + $0xc0] sm:$0xff] }
  0x6e   : > { %979 = vmatpush1.bf16.msra.mxu0 %v978_v51  ;;  %917 = vmatprep.subr.bf16.mxu1 %v916_v52  ;;  %v461_v14 = vld [vmem:[%s1448_s29 + $0xd0] sm:$0xff]  ;;  %v523_v15 = vld [vmem:[%s1448_s29 + $0x2c0] sm:$0xff]  ;;  %v988_v16 = vpack.c.bf16 %v526_v9, %v524_v8  ;;  %v464_v18 = vld [vmem:[%s1448_s29 + $0xe8] sm:$0xff] }
  0x6f   : > { %981 = vmatprep.subr.bf16.mxu0 %v980_v56  ;;  %v525_v17 = vld [vmem:[%s1448_s29 + $0x2d0] sm:$0xff]  ;;  %v466_v19 = vld [vmem:[%s1448_s29 + $0xf8] sm:$0xff]  ;;  %v528_v20 = vld [vmem:[%s1448_s29 + $0x2e8] sm:$0xff]  ;;  %v926_v22 = vpack.c.bf16 %v461_v14, %v459_v13 }
  0x70   : > { %v530_v21 = vld [vmem:[%s1448_s29 + $0x2f8] sm:$0xff]  ;;  %v990_v23 = vpack.c.bf16 %v525_v17, %v523_v15  ;;  %v928_v24 = vpack.c.bf16 %v466_v19, %v464_v18  ;;  %v463_v25 = vld [vmem:[%s1448_s29 + $0xe0] sm:$0xff]  ;;  %v465_v26 = vld [vmem:[%s1448_s29 + $0xf0] sm:$0xff] }
  0x71   : > { %919 = vmatpush1.bf16.msra.mxu1 %v918_v62  ;;  %v527_v27 = vld [vmem:[%s1448_s29 + $0x2e0] sm:$0xff]  ;;  %v992_v28 = vpack.c.bf16 %v530_v21, %v528_v20  ;;  %v529_v29 = vld [vmem:[%s1448_s29 + $0x2f0] sm:$0xff]  ;;  %v468_v30 = vld [vmem:[%s1448_s29 + $0x108] sm:$0xff]  ;;  %v930_v34 = vpack.c.bf16 %v465_v26, %v463_v25 }
  0x72   : > { %983 = vmatpush1.bf16.msra.mxu0 %v982_v63  ;;  %921 = vmatprep.subr.bf16.mxu1 %v920_v0  ;;  %v470_v31 = vld [vmem:[%s1448_s29 + $0x118] sm:$0xff]  ;;  %v532_v32 = vld [vmem:[%s1448_s29 + $0x308] sm:$0xff]  ;;  %v994_v35 = vpack.c.bf16 %v529_v29, %v527_v27  ;;  %v467_v37 = vld [vmem:[%s1448_s29 + $0x100] sm:$0xff] }
  0x73   : > { %985 = vmatprep.subr.bf16.mxu0 %v984_v4  ;;  %v534_v33 = vld [vmem:[%s1448_s29 + $0x318] sm:$0xff]  ;;  %v932_v36 = vpack.c.bf16 %v470_v31, %v468_v30  ;;  %v469_v38 = vld [vmem:[%s1448_s29 + $0x110] sm:$0xff]  ;;  %v531_v39 = vld [vmem:[%s1448_s29 + $0x300] sm:$0xff] }
  0x74   : > { %v996_v40 = vpack.c.bf16 %v534_v33, %v532_v32  ;;  %v533_v41 = vld [vmem:[%s1448_s29 + $0x310] sm:$0xff]  ;;  %v472_v42 = vld [vmem:[%s1448_s29 + $0x128] sm:$0xff]  ;;  %v474_v43 = vld [vmem:[%s1448_s29 + $0x138] sm:$0xff]  ;;  %v934_v46 = vpack.c.bf16 %v469_v38, %v467_v37 }
  0x75   : > { %923 = vmatpush1.bf16.msra.mxu1 %v922_v10  ;;  %v536_v44 = vld [vmem:[%s1448_s29 + $0x328] sm:$0xff]  ;;  %v538_v45 = vld [vmem:[%s1448_s29 + $0x338] sm:$0xff]  ;;  %v998_v47 = vpack.c.bf16 %v533_v41, %v531_v39  ;;  %v936_v48 = vpack.c.bf16 %v474_v43, %v472_v42  ;;  %v471_v49 = vld [vmem:[%s1448_s29 + $0x120] sm:$0xff] }
  0x76   : > { %987 = vmatpush1.bf16.msra.mxu0 %v986_v11  ;;  %925 = vmatprep.subr.bf16.mxu1 %v924_v12  ;;  %v473_v50 = vld [vmem:[%s1448_s29 + $0x130] sm:$0xff]  ;;  %v535_v51 = vld [vmem:[%s1448_s29 + $0x320] sm:$0xff]  ;;  %v1000_v52 = vpack.c.bf16 %v538_v45, %v536_v44  ;;  %v476_v54 = vld [vmem:[%s1448_s29 + $0x148] sm:$0xff] }
  0x77   : > { %989 = vmatprep.subr.bf16.mxu0 %v988_v16  ;;  %v537_v53 = vld [vmem:[%s1448_s29 + $0x330] sm:$0xff]  ;;  %v478_v55 = vld [vmem:[%s1448_s29 + $0x158] sm:$0xff]  ;;  %v540_v56 = vld [vmem:[%s1448_s29 + $0x348] sm:$0xff]  ;;  %v938_v58 = vpack.c.bf16 %v473_v50, %v471_v49 }
  0x78   : > { %v542_v57 = vld [vmem:[%s1448_s29 + $0x358] sm:$0xff]  ;;  %v1002_v59 = vpack.c.bf16 %v537_v53, %v535_v51  ;;  %v940_v60 = vpack.c.bf16 %v478_v55, %v476_v54  ;;  %v475_v61 = vld [vmem:[%s1448_s29 + $0x140] sm:$0xff]  ;;  %v477_v62 = vld [vmem:[%s1448_s29 + $0x150] sm:$0xff] }
  0x79   : > { %927 = vmatpush1.bf16.msra.mxu1 %v926_v22  ;;  %v539_v63 = vld [vmem:[%s1448_s29 + $0x340] sm:$0xff]  ;;  %v1004_v0 = vpack.c.bf16 %v542_v57, %v540_v56  ;;  %v541_v1 = vld [vmem:[%s1448_s29 + $0x350] sm:$0xff]  ;;  %v480_v2 = vld [vmem:[%s1448_s29 + $0x168] sm:$0xff]  ;;  %v942_v6 = vpack.c.bf16 %v477_v62, %v475_v61 }
  0x7a   : > { %991 = vmatpush1.bf16.msra.mxu0 %v990_v23  ;;  %929 = vmatprep.subr.bf16.mxu1 %v928_v24  ;;  %v482_v3 = vld [vmem:[%s1448_s29 + $0x178] sm:$0xff]  ;;  %v544_v4 = vld [vmem:[%s1448_s29 + $0x368] sm:$0xff]  ;;  %v479_v7 = vld [vmem:[%s1448_s29 + $0x160] sm:$0xff]  ;;  %v1006_v10 = vpack.c.bf16 %v541_v1, %v539_v63 }
  0x7b   : > { %993 = vmatprep.subr.bf16.mxu0 %v992_v28  ;;  %v546_v5 = vld [vmem:[%s1448_s29 + $0x378] sm:$0xff]  ;;  %v481_v8 = vld [vmem:[%s1448_s29 + $0x170] sm:$0xff]  ;;  %v543_v9 = vld [vmem:[%s1448_s29 + $0x360] sm:$0xff]  ;;  %v944_v11 = vpack.c.bf16 %v482_v3, %v480_v2 }
  0x7c   : > { %v545_v12 = vld [vmem:[%s1448_s29 + $0x370] sm:$0xff]  ;;  %v484_v13 = vld [vmem:[%s1448_s29 + $0x188] sm:$0xff]  ;;  %v486_v14 = vld [vmem:[%s1448_s29 + $0x198] sm:$0xff]  ;;  %v1008_v15 = vpack.c.bf16 %v546_v5, %v544_v4  ;;  %v946_v23 = vpack.c.bf16 %v481_v8, %v479_v7 }
  0x7d   : > { %931 = vmatpush1.bf16.msra.mxu1 %v930_v34  ;;  %v548_v16 = vld [vmem:[%s1448_s29 + $0x388] sm:$0xff]  ;;  %v550_v17 = vld [vmem:[%s1448_s29 + $0x398] sm:$0xff]  ;;  %v1555_v19 = vld [vmem:[%s1448_s29 + $0x180] sm:$0xff]  ;;  %v1010_v29 = vpack.c.bf16 %v545_v12, %v543_v9  ;;  %v948_v30 = vpack.c.bf16 %v486_v14, %v484_v13 }
  0x7e   : > { %995 = vmatpush1.bf16.msra.mxu0 %v994_v35  ;;  %933 = vmatprep.subr.bf16.mxu1 %v932_v36  ;;  %v258_v18 = vld [vmem:[#allocation3 + $0x8] sm:$0xff]  ;;  %v1558_v20 = vld [vmem:[%s1448_s29 + $0x190] sm:$0xff]  ;;  %v1561_v24 = vld [vmem:[%s1448_s29 + $0x380] sm:$0xff]  ;;  %v1012_v36 = vpack.c.bf16 %v550_v17, %v548_v16 }
  0x7f   : > { %997 = vmatprep.subr.bf16.mxu0 %v996_v40  ;;  %v262_v21 = vld [vmem:[#allocation3 + $0x28] sm:$0xff]  ;;  %v1564_v25 = vld [vmem:[%s1448_s29 + $0x390] sm:$0xff]  ;;  %v1570_v27 = vld [vmem:[%s1448_s29 + $0x1b8] sm:$0xff] }
  0x80   : > { %v266_v22 = vld [vmem:[#allocation3 + $0x48] sm:$0xff]  ;;  %v334_v28 = vadd.f32 %v262_v21, %v258_v18  ;;  %v1576_v32 = vld [vmem:[%s1448_s29 + $0x3b8] sm:$0xff]  ;;  %v1579_v37 = vld [vmem:[%s1448_s29 + $0x1a0] sm:$0xff]  ;;  %v1014_v55 = vpack.c.bf16 %v1564_v25, %v1561_v24 }
  0x81   : > { %935 = vmatpush1.bf16.msra.mxu1 %v934_v46  ;;  %v1567_v26 = vld [vmem:[%s1448_s29 + $0x1a8] sm:$0xff]  ;;  %v1582_v38 = vld [vmem:[%s1448_s29 + $0x1b0] sm:$0xff]  ;;  %v1585_v42 = vld [vmem:[%s1448_s29 + $0x3a0] sm:$0xff]  ;;  %v950_v46 = vpack.c.bf16 %v1558_v20, %v1555_v19 }
  0x82   : > { %999 = vmatpush1.bf16.msra.mxu0 %v998_v47  ;;  %937 = vmatprep.subr.bf16.mxu1 %v936_v48  ;;  %v1573_v31 = vld [vmem:[%s1448_s29 + $0x3a8] sm:$0xff]  ;;  %v335_v40 = vadd.f32 %v334_v28, %v266_v22  ;;  %v1588_v43 = vld [vmem:[%s1448_s29 + $0x3b0] sm:$0xff]  ;;  %v1596_v48 = vld [vmem:[%s1448_s29 + $0x1d8] sm:$0xff]  ;;  %v952_v56 = vpack.c.bf16 %v1570_v27, %v1567_v26  ;;  %v954_v9 = vpack.c.bf16 %v1582_v38, %v1579_v37 }
  0x83   : > { %1001 = vmatprep.subr.bf16.mxu0 %v1000_v52  ;;  %v270_v33 = vld [vmem:[#allocation3 + $0x68] sm:$0xff]  ;;  %v260_v52 = vld [vmem:[#allocation3 + $0x18] sm:$0xff]  ;;  %v1016_v61 = vpack.c.bf16 %v1576_v32, %v1573_v31  ;;  %v1611_v62 = vld [vmem:[%s1448_s29 + $0x1c0] sm:$0xff]  ;;  %v1018_v14 = vpack.c.bf16 %v1588_v43, %v1585_v42 }
  0x84   : > { %v290_v34 = vld [vmem:[#allocation3 + $0x108] sm:$0xff]  ;;  %v336_v50 = vadd.f32 %v335_v40, %v270_v33  ;;  %v264_v53 = vld [vmem:[#allocation3 + $0x38] sm:$0xff]  ;;  %v1614_v63 = vld [vmem:[%s1448_s29 + $0x1d0] sm:$0xff] }
  0x85   : > { %939 = vmatpush1.bf16.msra.mxu1 %v938_v58  ;;  %v294_v35 = vld [vmem:[#allocation3 + $0x128] sm:$0xff]  ;;  %v268_v54 = vld [vmem:[#allocation3 + $0x58] sm:$0xff]  ;;  %v1620_v1 = vld [vmem:[%s1448_s29 + $0x3d0] sm:$0xff]  ;;  %v958_v40 = vpack.c.bf16 %v1614_v63, %v1611_v62 }
  0x86   : > { %1003 = vmatpush1.bf16.msra.mxu0 %v1002_v59  ;;  %941 = vmatprep.subr.bf16.mxu1 %v940_v60  ;;  %v298_v39 = vld [vmem:[#allocation3 + $0x148] sm:$0xff]  ;;  %v386_v41 = vadd.f32 %v294_v35, %v290_v34  ;;  %v1606_v57 = vld [vmem:[%s1448_s29 + $0x3d8] sm:$0xff]  ;;  %v360_v60 = vadd.f32 %v264_v53, %v260_v52  ;;  %v257_v27 = vld [vmem:[#allocation3] sm:$0xff] }
  0x87   : > { %1005 = vmatprep.subr.bf16.mxu0 %v1004_v0  ;;  %v274_v44 = vld [vmem:[#allocation3 + $0x88] sm:$0xff]  ;;  %v1617_v0 = vld [vmem:[%s1448_s29 + $0x3c0] sm:$0xff]  ;;  %v1626_v3 = vld [vmem:[%s1448_s29 + $0x1f8] sm:$0xff] }
  0x88   : > { %v302_v45 = vld [vmem:[#allocation3 + $0x168] sm:$0xff]  ;;  %v387_v51 = vadd.f32 %v386_v41, %v298_v39  ;;  %v337_v5 = vadd.f32 %v336_v50, %v274_v44  ;;  %v272_v7 = vld [vmem:[#allocation3 + $0x78] sm:$0xff]  ;;  %v361_v13 = vadd.f32 %v360_v60, %v268_v54  ;;  %v261_v28 = vld [vmem:[#allocation3 + $0x20] sm:$0xff]  ;;  %v1022_v41 = vpack.c.bf16 %v1620_v1, %v1617_v0 }
  0x89   : > { %943 = vmatpush1.bf16.msra.mxu1 %v942_v6  ;;  %v1593_v47 = vld [vmem:[%s1448_s29 + $0x1c8] sm:$0xff]  ;;  %v292_v8 = vld [vmem:[#allocation3 + $0x118] sm:$0xff]  ;;  %v1649_v31 = vld [vmem:[%s1448_s29 + $0x3e0] sm:$0xff]  ;;  %v321_v39 = vadd.f32 %v261_v28, %v257_v27 }
  0x8a   : > { %1007 = vmatpush1.bf16.msra.mxu0 %v1006_v10  ;;  %945 = vmatprep.subr.bf16.mxu1 %v944_v11  ;;  %v1599_v49 = vld [vmem:[%s1448_s29 + $0x3c8] sm:$0xff]  ;;  %v388_v6 = vadd.f32 %v387_v51, %v302_v45  ;;  %v296_v11 = vld [vmem:[#allocation3 + $0x138] sm:$0xff]  ;;  %v362_v26 = vadd.f32 %v361_v13, %v272_v7  ;;  %v1652_v32 = vld [vmem:[%s1448_s29 + $0x3f0] sm:$0xff] }
  0x8b   : > { %1009 = vmatprep.subr.bf16.mxu0 %v1008_v15  ;;  %v278_v58 = vld [vmem:[#allocation3 + $0xa8] sm:$0xff]  ;;  %v300_v12 = vld [vmem:[#allocation3 + $0x158] sm:$0xff]  ;;  %v412_v22 = vadd.f32 %v296_v11, %v292_v8  ;;  %v1020_v24 = vpack.c.bf16 %v1606_v57, %v1599_v49  ;;  %v265_v38 = vld [vmem:[#allocation3 + $0x40] sm:$0xff] }
  0x8c   : > { %v306_v59 = vld [vmem:[#allocation3 + $0x188] sm:$0xff]  ;;  %v1636_v16 = vld [vmem:[%s1448_s29 + $0x3f8] sm:$0xff]  ;;  %v338_v19 = vadd.f32 %v337_v5, %v278_v58  ;;  %v289_v50 = vld [vmem:[#allocation3 + $0x100] sm:$0xff]  ;;  %v322_v53 = vadd.f32 %v321_v39, %v265_v38 }
  0x8d   : > { %947 = vmatpush1.bf16.msra.mxu1 %v946_v23  ;;  %v1623_v2 = vld [vmem:[%s1448_s29 + $0x1e8] sm:$0xff]  ;;  %v389_v20 = vadd.f32 %v388_v6, %v306_v59  ;;  %v276_v21 = vld [vmem:[#allocation3 + $0x98] sm:$0xff]  ;;  %v956_v23 = vpack.c.bf16 %v1596_v48, %v1593_v47  ;;  %v413_v37 = vadd.f32 %v412_v22, %v300_v12  ;;  %v293_v51 = vld [vmem:[#allocation3 + $0x120] sm:$0xff] }
  0x8e   : > { %1011 = vmatpush1.bf16.msra.mxu0 %v1010_v29  ;;  %949 = vmatprep.subr.bf16.mxu1 %v948_v30  ;;  %v282_v4 = vld [vmem:[#allocation3 + $0xc8] sm:$0xff]  ;;  %v304_v25 = vld [vmem:[#allocation3 + $0x178] sm:$0xff]  ;;  %v1643_v29 = vld [vmem:[%s1448_s29 + $0x1e0] sm:$0xff]  ;;  %v960_v42 = vpack.c.bf16 %v1626_v3, %v1623_v2  ;;  %v363_v45 = vadd.f32 %v362_v26, %v276_v21  ;;  %v373_v58 = vadd.f32 %v293_v51, %v289_v50 }
  0x8f   : > { %1013 = vmatprep.subr.bf16.mxu0 %v1012_v36  ;;  %v310_v10 = vld [vmem:[#allocation3 + $0x1a8] sm:$0xff]  ;;  %v1646_v30 = vld [vmem:[%s1448_s29 + $0x1f0] sm:$0xff]  ;;  %v339_v34 = vadd.f32 %v338_v19, %v282_v4  ;;  %v280_v36 = vld [vmem:[#allocation3 + $0xb8] sm:$0xff]  ;;  %v414_v49 = vadd.f32 %v413_v37, %v304_v25  ;;  %v1026_v3 = vpack.c.bf16 %v1652_v32, %v1649_v31 }
  0x90   : > { %v1633_v15 = vld [vmem:[%s1448_s29 + $0x3e8] sm:$0xff]  ;;  %v390_v35 = vadd.f32 %v389_v20, %v310_v10  ;;  %v284_v43 = vld [vmem:[#allocation3 + $0xd8] sm:$0xff]  ;;  %v297_v52 = vld [vmem:[#allocation3 + $0x140] sm:$0xff]  ;;  %v962_v2 = vpack.c.bf16 %v1646_v30, %v1643_v29 }
  0x91   : > { %951 = vmatpush1.bf16.msra.mxu1 %v950_v46  ;;  %v286_v17 = vld [vmem:[#allocation3 + $0xe8] sm:$0xff]  ;;  %v308_v44 = vld [vmem:[#allocation3 + $0x198] sm:$0xff]  ;;  %v269_v46 = vld [vmem:[#allocation3 + $0x60] sm:$0xff]  ;;  %v1024_v54 = vpack.c.bf16 %v1636_v16, %v1633_v15  ;;  %v374_v7 = vadd.f32 %v373_v58, %v297_v52 }
  0x92   : > { %v314_v18 = vld [vmem:[#allocation3 + $0x1c8] sm:$0xff]  ;;  %1015 = vmatpush1.bf16.msra.mxu0 %v1014_v55  ;;  %953 = vmatprep.subr.bf16.mxu1 %v952_v56  ;;  %v340_v47 = vadd.f32 %v339_v34, %v286_v17  ;;  %v312_v55 = vld [vmem:[#allocation3 + $0x1b8] sm:$0xff]  ;;  %v364_v56 = vadd.f32 %v363_v45, %v280_v36  ;;  %v273_v57 = vld [vmem:[#allocation3 + $0x80] sm:$0xff]  ;;  %v415_v62 = vadd.f32 %v414_v49, %v308_v44 }
  0x93   : > { %1017 = vmatprep.subr.bf16.mxu0 %v1016_v61  ;;  %v318_v33 = vld [vmem:[#allocation3 + $0x1e8] sm:$0xff]  ;;  %v391_v48 = vadd.f32 %v390_v35, %v314_v18  ;;  %v288_v61 = vld [vmem:[#allocation3 + $0xf8] sm:$0xff]  ;;  %v301_v63 = vld [vmem:[#allocation3 + $0x160] sm:$0xff]  ;;  %v323_v0 = vadd.f32 %v322_v53, %v269_v46 }
  0x94   : > { %v341_v59 = vrot.slane %v340_v47, 4  ;;  %v259_v1 = vld [vmem:[#allocation3 + $0x10] sm:$0xff]  ;;  %v316_v4 = vld [vmem:[#allocation3 + $0x1d8] sm:$0xff]  ;;  %v365_v5 = vadd.f32 %v364_v56, %v284_v43  ;;  %v277_v6 = vld [vmem:[#allocation3 + $0xa0] sm:$0xff]  ;;  %v416_v12 = vadd.f32 %v415_v62, %v312_v55  ;;  %v375_v18 = vadd.f32 %v374_v7, %v301_v63 }
  0x95   : > { %955 = vmatpush1.bf16.msra.mxu1 %v954_v9  ;;  %v392_v60 = vadd.f32 %v391_v48, %v318_v33  ;;  %v263_v8 = vld [vmem:[#allocation3 + $0x30] sm:$0xff]  ;;  %v320_v11 = vld [vmem:[#allocation3 + $0x1f8] sm:$0xff]  ;;  %v305_v13 = vld [vmem:[#allocation3 + $0x180] sm:$0xff] }
  0x96   : > { %1019 = vmatpush1.bf16.msra.mxu0 %v1018_v14  ;;  %957 = vmatprep.subr.bf16.mxu1 %v956_v23  ;;  %v342_v9 = vadd.f32 %v341_v59, %v340_v47  ;;  %v324_v14 = vadd.f32 %v323_v0, %v273_v57  ;;  %v267_v15 = vld [vmem:[#allocation3 + $0x50] sm:$0xff]  ;;  %v366_v16 = vadd.f32 %v365_v5, %v288_v61  ;;  %v281_v17 = vld [vmem:[#allocation3 + $0xc0] sm:$0xff] }
  0x97   : > { %1021 = vmatprep.subr.bf16.mxu0 %v1020_v24  ;;  %v393_v10 = vrot.slane %v392_v60, 4  ;;  %v291_v19 = vld [vmem:[#allocation3 + $0x110] sm:$0xff]  ;;  %v347_v21 = vadd.f32 %v263_v8, %v259_v1  ;;  %v417_v24 = vadd.f32 %v416_v12, %v316_v4  ;;  %v309_v25 = vld [vmem:[#allocation3 + $0x1a0] sm:$0xff]  ;;  %v376_v31 = vadd.f32 %v375_v18, %v305_v13 }
  0x98   : > { %v295_v20 = vld [vmem:[#allocation3 + $0x130] sm:$0xff]  ;;  %v343_v22 = vrot.slane %v342_v9, 2  ;;  %v325_v26 = vadd.f32 %v324_v14, %v277_v6  ;;  %v367_v29 = vrot.slane %v366_v16, 4  ;;  %v285_v30 = vld [vmem:[#allocation3 + $0xe0] sm:$0xff] }
  0x99   : > { %959 = vmatpush1.bf16.msra.mxu1 %v958_v40  ;;  %v394_v23 = vadd.f32 %v393_v10, %v392_v60  ;;  %v271_v27 = vld [vmem:[#allocation3 + $0x70] sm:$0xff]  ;;  %v348_v32 = vadd.f32 %v347_v21, %v267_v15  ;;  %v399_v33 = vadd.f32 %v295_v20, %v291_v19  ;;  %v418_v36 = vadd.f32 %v417_v24, %v320_v11  ;;  %v313_v37 = vld [vmem:[#allocation3 + $0x1c0] sm:$0xff] }
  0x9a   : > { %1023 = vmatpush1.bf16.msra.mxu0 %v1022_v41  ;;  %961 = vmatprep.subr.bf16.mxu1 %v960_v42  ;;  %v299_v28 = vld [vmem:[#allocation3 + $0x150] sm:$0xff]  ;;  %v344_v34 = vadd.f32 %v343_v22, %v342_v9  ;;  %v326_v38 = vadd.f32 %v325_v26, %v281_v17  ;;  %v368_v41 = vadd.f32 %v367_v29, %v366_v16  ;;  %v317_v48 = vld [vmem:[#allocation3 + $0x1e0] sm:$0xff] }
  0x9b   : > { %1025 = vmatprep.subr.bf16.mxu0 %v1024_v54  ;;  %v395_v35 = vrot.slane %v394_v23, 2  ;;  %v275_v39 = vld [vmem:[#allocation3 + $0x90] sm:$0xff]  ;;  %v377_v42 = vadd.f32 %v376_v31, %v309_v25  ;;  %v349_v43 = vadd.f32 %v348_v32, %v271_v27  ;;  %v400_v44 = vadd.f32 %v399_v33, %v299_v28 }
  0x9c   : > { %v303_v40 = vld [vmem:[#allocation3 + $0x170] sm:$0xff]  ;;  %v345_v45 = vrot.slane %v344_v34, 1  ;;  %v419_v47 = vrot.slane %v418_v36, 4  ;;  %v327_v49 = vadd.f32 %v326_v38, %v285_v30  ;;  %v369_v52 = vrot.slane %v368_v41, 2 }
  0x9d   : > { %963 = vmatpush1.bf16.msra.mxu1 %v962_v2  ;;  %v396_v46 = vadd.f32 %v395_v35, %v394_v23  ;;  %v279_v50 = vld [vmem:[#allocation3 + $0xb0] sm:$0xff]  ;;  %v378_v53 = vadd.f32 %v377_v42, %v313_v37  ;;  %v350_v54 = vadd.f32 %v349_v43, %v275_v39  ;;  %v401_v55 = vadd.f32 %v400_v44, %v303_v40 }
  0x9e   : > { %1027 = vmatpush1.bf16.msra.mxu0 %v1026_v3  ;;  %v307_v51 = vld [vmem:[#allocation3 + $0x190] sm:$0xff]  ;;  %v346_v56 = vadd.f32 %v345_v45, %v344_v34  ;;  %v420_v58 = vadd.f32 %v419_v47, %v418_v36  ;;  %v328_v59 = vrot.slane %v327_v49, 4  ;;  %v370_v62 = vadd.f32 %v369_v52, %v368_v41 }
  0x9f   : > { %v397_v57 = vrot.slane %v396_v46, 1  ;;  %v283_v60 = vld [vmem:[#allocation3 + $0xd0] sm:$0xff]  ;;  %v379_v63 = vadd.f32 %v378_v53, %v317_v48  ;;  %v351_v0 = vadd.f32 %v350_v54, %v279_v50  ;;  %v402_v1 = vadd.f32 %v401_v55, %v307_v51 }
  0xa0   : > { %v311_v61 = vld [vmem:[#allocation3 + $0x1b0] sm:$0xff]  ;;  %v427_v3 = vmul.f32 0.015625, %v346_v56  ;;  %v421_v4 = vrot.slane %v420_v58, 2  ;;  %v329_v5 = vadd.f32 %v328_v59, %v327_v49  ;;  %v371_v8 = vrot.slane %v370_v62, 1 }
  0xa1   : > { %v398_v2 = vadd.f32 %v397_v57, %v396_v46  ;;  %v287_v6 = vld [vmem:[#allocation3 + $0xf0] sm:$0xff]  ;;  %v380_v9 = vrot.slane %v379_v63, 4  ;;  %v352_v10 = vadd.f32 %v351_v0, %v283_v60  ;;  %v403_v11 = vadd.f32 %v402_v1, %v311_v61 }
  0xa2   : > { %v315_v7 = vld [vmem:[#allocation3 + $0x1d0] sm:$0xff]  ;;  %v422_v13 = vadd.f32 %v421_v4, %v420_v58  ;;  %v330_v14 = vrot.slane %v329_v5, 2  ;;  %v372_v16 = vadd.f32 %v371_v8, %v370_v62  ;;  %v1261_v52 = vmov 0.0  }
  0xa3   : > { %v431_v12 = vmul.f32 0.015625, %v398_v2  ;;  %v319_v15 = vld [vmem:[#allocation3 + $0x1f0] sm:$0xff]  ;;  %v381_v17 = vadd.f32 %v380_v9, %v379_v63  ;;  %v353_v18 = vadd.f32 %v352_v10, %v287_v6  ;;  %v404_v19 = vadd.f32 %v403_v11, %v315_v7  ;;  %256 = vst [vmem:[#allocation2] sm:$0xf] %v1261_v52 }
  0xa4   : > { %v423_v21 = vrot.slane %v422_v13, 1  ;;  %v331_v22 = vadd.f32 %v330_v14, %v329_v5  ;;  %v429_v27 = vmul.f32 0.015625, %v372_v16  ;;  %v1262_v54 = vmov 1983009808   ;;  %v740_v5 = vld [vmem:[%s249_s18] sm:$0x3] }
  0xa5   : > { %v573_v20 = vsel %vm571_vm0, %v431_v12, %v427_v3  ;;  %v382_v23 = vrot.slane %v381_v17, 2  ;;  %v354_v24 = vrot.slane %v353_v18, 4  ;;  %v405_v25 = vadd.f32 %v404_v19, %v319_v15 }
  0xa6   : > { %644 = vmatprep.mubr.f32.mxu1 %v573_v20  ;;  %v424_v26 = vadd.f32 %v423_v21, %v422_v13  ;;  %v332_v28 = vrot.slane %v331_v22, 1  ;;  %v726_v55 = vunpack.c.l.s4 %v1262_v54  ;;  %v728_v56 = vlaneseq }
  0xa7   : > { %v383_v29 = vadd.f32 %v382_v23, %v381_v17  ;;  %v355_v30 = vadd.f32 %v354_v24, %v353_v18  ;;  %v406_v31 = vrot.slane %v405_v25, 4 }
  0xa8   : > { %v433_v32 = vmul.f32 0.015625, %v424_v26  ;;  %v333_v33 = vadd.f32 %v332_v28, %v331_v22  ;;  %v727_v58 = vunpack.c.0.s8 %v726_v55  ;;  %v729_v59 = vshrl.u32 %v728_v56, 7 }
  0xa9   : > { %v384_v34 = vrot.slane %v383_v29, 1  ;;  %v356_v35 = vrot.slane %v355_v30, 2  ;;  %v407_v36 = vadd.f32 %v406_v31, %v405_v25 }
  0xaa   : > { %v575_v37 = vsel %vm571_vm0, %v433_v32, %v429_v27  ;;  %v426_v39 = vmul.f32 0.015625, %v333_v33  ;;  %v730_v0 = vsub.s32 %v727_v58, %v729_v59  ;;  %v744_v2 = vsub.s32 0, %v729_v59  ;;  %v434_v4 = vld [vmem:[#allocation2] sm:$0xf] }
  0xab   : > { %715 = vmatprep.mubr.f32.mxu0 %v575_v37  ;;  %v385_v38 = vadd.f32 %v384_v34, %v383_v29  ;;  %v357_v40 = vadd.f32 %v356_v35, %v355_v30  ;;  %v408_v41 = vrot.slane %v407_v36, 2  ;;  %v748_v3 = vsub.s32 1, %v729_v59 }
  0xac   : > { %v745_v8 = vrot.slane %v740_v5, %v744_v2 }
  0xad   : > { %v430_v42 = vmul.f32 0.015625, %v385_v38  ;;  %v358_v43 = vrot.slane %v357_v40, 1  ;;  %v409_v44 = vadd.f32 %v408_v41, %v407_v36  ;;  %v749_v9 = vrot.slane %v740_v5, %v748_v3 }
  0xaf   : > { %v572_v45 = vsel %vm571_vm0, %v430_v42, %v426_v39  ;;  %v359_v46 = vadd.f32 %v358_v43, %v357_v40  ;;  %v410_v47 = vrot.slane %v409_v44, 1  ;;  %v750_v10 = vcombine.low %v745_v8, %v749_v9 }
  0xb0   : > { %645 = vmatmul.mubr.f32.vlgmr.msra.gmra.mrb[0].mxu1 %v572_v45 }
  0xb1   : > { %v411_v48 = vadd.f32 %v410_v47, %v409_v44  ;;  %v428_v49 = vmul.f32 0.015625, %v359_v46  ;;  %v757_v11 = vrot.slane %v750_v10, %v730_v0 }
  0xb3   : > { %v432_v50 = vmul.f32 0.015625, %v411_v48 }
  0xb5   : > { %v574_v51 = vsel %vm571_vm0, %v432_v50, %v428_v49 }
  0xb6   : > { %716 = vmatmul.mubr.f32.vlgmr.msra.gmra.mrb[0].mxu0 %v574_v51 }
 0x183   : > { %v646_v53 = vpop.f32.mrb[0].mxu1 }
 0x184   : > { %v648_v57 = vpop.f32.mrb[1].mxu1 }
 0x189   : > { %v717_v60 = vpop.f32.mrb[0].mxu0 }
 0x18a   : > { %v718_v61 = vadd.f32 %v717_v60, %v646_v53  ;;  %v719_v62 = vpop.f32.mrb[1].mxu0 }
 0x18b   : > { %v720_v63 = vadd.f32 %v719_v62, %v648_v57 }
 0x18d   : > { %v724_v1 = vcombine.low %v718_v61, %v720_v63 }
 0x18f   : > { %v731_v6 = vrot.slane %v724_v1, %v730_v0 }
 0x191   : > { %v733_v7 = vadd.f32 %v731_v6, %v434_v4 }
 0x193   : > { %734 = vst [vmem:[#allocation2] sm:$0xf] %v733_v7 }
 0x19a   : > { %v738_v12 = vld [vmem:[#allocation2] sm:$0xf] }
 0x19b   : > { %v739_v13 = vmul.f32 0.044194173, %v738_v12 }
 0x19d   : > { %v759_v14 = vadd.f32 %v757_v11, %v739_v13 }
 0x19f   : > { %760 = vst [vmem:[%s242_s21] sm:$0xf] %v759_v14 }
 0x1a0   : > { %1180 = shalt.err (!%p1177_p0)
}
 0x1a1   : > { %s1181_s9 = scalar_lea.hbm %s1679_s7, 64  ;;  %s1185_s22 = scalar_lea.hbm %s1731_s3, 128 }
 0x1a2   : > { %p1182_p2 = scmp.ne.s32.totalorder %s1679_s7, %s1181_s9  ;;  %p1186_p5 = scmp.lt.u32.totalorder %s1679_s7, %s1731_s3 }
 0x1a3   : > { %p1187_p8 = scmp.lt.u32.totalorder %s1185_s22, %s1181_s9  ;;  %p1189_p11 = scmp.lt.u32.totalorder %s1181_s9, %s1679_s7 }
 0x1a4   : > { %p1183_p7 = pnand %p1182_p2, %p1750_p13 }
 0x1a5   : > { %p1188_p9 = por %p1187_p8, %p1186_p5 }
 0x1a6   : > { %p1184_p12 = pneg %p1183_p7 }
 0x1a7   : > { %p1190_p4 = por %p1189_p11, %p1188_p9 }
 0x1a9   : > { %p1191_p1 = pnand %p1190_p4, %p1184_p12 }
 0x1ab   : > { %1194 = shalt.err (!%p1191_p1)
}
 0x1ac   : > { %1036 = dma.vmem_to_hbm [thread:$0]  (%p1750_p13), %s1681_s4, 64, %s1679_s7, %s762_s26  }
 0x1ad PF: > { %s788_s10 = sand.u32 1, %s1233_s12   ;;  %p1751_p10 = scmp.ne.s32.totalorder %s1742_s24, 0 }
 0x1ae   : > { %p1752_p3 = scmp.ge.s32.totalorder %s1253_s17, 2  ;;  %s789_s11 = scalar_lea.sflag [#allocation5], %s788_s10 }
 0x1b0   : > { %p1047_p6 = pnand %p1752_p3, %p1751_p10 }
 0x1b2   : > { %1228 = dma.done.wait (!%p1047_p6), %s789_s11, 64  }
 0x1b3   : > { %1230 = vsyncadd (!%p1047_p6), %s789_s11, 4294967232  ;;  %s20_s17 = sadd.s32 1, %s1253_s17   ;;  %s1753_s12 = smov %s1237_s13 }
 0x1b4   : > { %p17_p0 = scmp.ge.s32.totalorder %s20_s17, 4   ;;  %s1754_s13 = smov %s1241_s14 }
 0x1b5   : > { %s1755_s14 = smov %s1404_s19  ;;  %s1756_s15 = smov %s1249_s16 }
 0x1b6   : > { %s1757_s16 = smov %s1759_s30  ;;  %19 = sbr.rel (!%p17_p0) target bundleno = 7 (0x7), region = 94 }
 0x1bd   :  { %794 = vsyncpa [#allocation4], 1 }
 0x1be   :  { %796 = vsyncpa [#allocation4 + $0x1], 1 }
 0x1bf   :  { %797 = vsyncpa [#allocation7], 1 }
 0x1c0   :  { %799 = vsyncpa [#allocation7 + $0x1], 1 }
 0x1c1   :  { %800 = vsyncpa [#allocation5], 1 }
 0x1c2   :  { %802 = vsyncpa [#allocation5 + $0x1], 1 }

</bundles_post_ra>
